<compile_context>
chip_gen: v5e
topology: v5e:2x2
jax: 0.10.0
libtpu: 0.0.40
codegen_flags: <defaults>
</compile_context>

<pallas_src>
import functools

import jax
import jax.numpy as jnp
from jax.experimental import pallas as pl
from jax.experimental.pallas import tpu as pltpu


def _round_up(x: int, m: int) -> int:
    return ((x + m - 1) // m) * m


def decoder_kernel(z_ref, w1_ref, b1_ref, w2_ref, b2_ref, out_ref):
    # In-kernel cast of the streamed activation to the MXU input dtype
    # (no-op for f32; avoids an extra un-fused HBM pass in the wrapper).
    z = z_ref[...].astype(w1_ref.dtype)
    # Two MXU matmuls with f32 accumulation; bias-add / ReLU on the VPU in f32.
    h = jnp.dot(z, w1_ref[...], preferred_element_type=jnp.float32) + b1_ref[...]
    h = jnp.maximum(h, 0.0)  # ReLU
    y = jnp.dot(h.astype(w2_ref.dtype), w2_ref[...],
                preferred_element_type=jnp.float32) + b2_ref[...]
    out_ref[...] = y.astype(out_ref.dtype)


@functools.partial(
    jax.jit, static_argnames=("block_b", "compute_dtype", "out_dtype")
)
def decoder_forward(z, w1, b1, w2, b2, *, block_b=4096,
                    compute_dtype=jnp.float32, out_dtype=jnp.float32):
    """Pallas forward pass of Decoder: relu(z @ w1 + b1) @ w2 + b2.

    z:  [B, latent_dim]
    w1: [latent_dim, hidden]   (pre-transposed vs. PyTorch)
    b1: [1, hidden]
    w2: [hidden, output_dim]   (pre-transposed vs. PyTorch)
    b2: [1, output_dim]
    Returns [B, output_dim] in out_dtype.
    """
    B, latent = z.shape
    hidden = w1.shape[1]
    out_dim = w2.shape[1]

    z_itemsize = jnp.dtype(z.dtype).itemsize
    out_itemsize = jnp.dtype(out_dtype).itemsize
    w_itemsize = jnp.dtype(compute_dtype).itemsize

    # --- Tile-size budget: keep double-buffered z+out under ~20 MiB (v7x-safe).
    per_row_bytes = latent * z_itemsize + out_dim * out_itemsize
    tb_cap = max(8, (((20 << 20) // (2 * per_row_bytes)) // 8) * 8)
    block_b = max(8, min(int(block_b), tb_cap))

    # --- Tile selection: big tiles that (nearly) divide B; >=2 tiles for big B
    #     so the "parallel" batch axis can use both v7x TensorCores.
    min_tiles = 2 if B >= 1024 else 1
    if B <= block_b and min_tiles == 1:
        tb = B            # single full-extent tile: no padding, no output slice
    else:
        n_tiles = max(pl.cdiv(B, block_b), min_tiles)
        tb = _round_up(pl.cdiv(B, n_tiles), 8)
    b_pad = _round_up(B, tb)
    if b_pad != B:
        z = jnp.pad(z, ((0, b_pad - B), (0, 0)))

    # --- dtype policy: weights in compute_dtype (tiny, cast once in wrapper),
    #     z cast *inside* the kernel, biases/accumulation in f32.
    w1 = w1.astype(compute_dtype)
    w2 = w2.astype(compute_dtype)
    b1 = b1.astype(jnp.float32)
    b2 = b2.astype(jnp.float32)

    grid = (b_pad // tb,)

    # --- VMEM limit sized from the actual double-buffered footprint + headroom.
    weight_bytes = ((latent * hidden + hidden * out_dim) * w_itemsize
                    + (hidden + out_dim) * 4)
    needed_bytes = 2 * (tb * per_row_bytes + weight_bytes)
    vmem_limit = int(min(max(needed_bytes + (4 << 20), 16 << 20), 64 << 20))

    flops = 2 * b_pad * (latent * hidden + hidden * out_dim)
    bytes_accessed = (
        b_pad * latent * z_itemsize           # z in
        + weight_bytes                        # weights + biases
        + b_pad * out_dim * out_itemsize      # output writeback
    )

    out = pl.pallas_call(
        decoder_kernel,
        out_shape=jax.ShapeDtypeStruct((b_pad, out_dim), out_dtype),
        grid=grid,
        in_specs=[
            pl.BlockSpec((tb, latent), lambda i: (i, 0)),       # z: streamed per tile
            pl.BlockSpec((latent, hidden), lambda i: (0, 0)),   # w1: resident
            pl.BlockSpec((1, hidden), lambda i: (0, 0)),        # b1: resident
            pl.BlockSpec((hidden, out_dim), lambda i: (0, 0)),  # w2: resident
            pl.BlockSpec((1, out_dim), lambda i: (0, 0)),       # b2: resident
        ],
        out_specs=pl.BlockSpec((tb, out_dim), lambda i: (i, 0)),
        compiler_params=pltpu.CompilerParams(
            dimension_semantics=("parallel",),  # shards batch tiles across v7x's 2 TCs
            vmem_limit_bytes=vmem_limit,
        ),
        cost_estimate=pl.CostEstimate(
            flops=flops, transcendentals=0, bytes_accessed=bytes_accessed
        ),
    )(z, w1, b1, w2, b2)

    if b_pad != B:
        out = out[:B]
    return out


def init_decoder_params(key, latent_dim, output_dim, hidden=128):
    # Deterministic init mimicking PyTorch's uniform(-1/sqrt(fan_in), 1/sqrt(fan_in)).
    k1, k2, k3, k4 = jax.random.split(key, 4)
    s1 = 1.0 / jnp.sqrt(latent_dim)
    s2 = 1.0 / jnp.sqrt(hidden)
    w1 = jax.random.uniform(k1, (latent_dim, hidden), jnp.float32, -s1, s1)
    b1 = jax.random.uniform(k2, (1, hidden), jnp.float32, -s1, s1)
    w2 = jax.random.uniform(k3, (hidden, output_dim), jnp.float32, -s2, s2)
    b2 = jax.random.uniform(k4, (1, output_dim), jnp.float32, -s2, s2)
    return w1, b1, w2, b2


def _reference(z, w1, b1, w2, b2):
    return jnp.maximum(z @ w1 + b1, 0.0) @ w2 + b2


if __name__ == "__main__":
    latent_dim = 32
    output_dim = 64
    hidden = 128

    key = jax.random.PRNGKey(0)
    k_params, k_z1, k_z2 = jax.random.split(key, 3)
    w1, b1, w2, b2 = init_decoder_params(k_params, latent_dim, output_dim, hidden)

    # --- Small batch: single full-extent tile, no padding, f32 path. ------------
    z_small = jax.random.normal(k_z1, (8, latent_dim), jnp.float32)
    out_small = jax.block_until_ready(decoder_forward(z_small, w1, b1, w2, b2))
    ref_small = _reference(z_small, w1, b1, w2, b2)
    assert out_small.shape == (8, output_dim)
    assert jnp.allclose(out_small, ref_small, atol=1e-5, rtol=1e-5)

    # --- Non-tile-multiple batch, single big tile (no pad, no slice). -----------
    z_big = jax.random.normal(k_z2, (300, latent_dim), jnp.float32)
    ref_big = _reference(z_big, w1, b1, w2, b2)
    out_big = jax.block_until_ready(decoder_forward(z_big, w1, b1, w2, b2))
    assert out_big.shape == (300, output_dim)
    assert jnp.allclose(out_big, ref_big, atol=1e-5, rtol=1e-5)

    # --- Forced multi-tile grid: exercises tiling + minimal batch padding. ------
    out_tiled = jax.block_until_ready(
        decoder_forward(z_big, w1, b1, w2, b2, block_b=128)
    )
    assert out_tiled.shape == (300, output_dim)
    assert jnp.allclose(out_tiled, ref_big, atol=1e-5, rtol=1e-5)

    # --- bf16 MXU path (f32 accumulate + f32 elementwise), loose tolerance. -----
    out_bf16 = jax.block_until_ready(
        decoder_forward(z_big, w1, b1, w2, b2, block_b=128,
                        compute_dtype=jnp.bfloat16)
    )
    assert out_bf16.shape == (300, output_dim)
    assert jnp.allclose(out_bf16, ref_big, atol=0.2, rtol=0.2)

    # --- Optional bf16 output store (halves the dominant HBM write stream). -----
    out_bf16_store = jax.block_until_ready(
        decoder_forward(z_big, w1, b1, w2, b2, out_dtype=jnp.bfloat16)
    )
    assert out_bf16_store.dtype == jnp.bfloat16
    assert jnp.allclose(out_bf16_store.astype(jnp.float32), ref_big,
                        atol=0.2, rtol=0.2)

    print("KERNEL_OK")
</pallas_src>

<mosaic_0001>
module attributes {stable_mosaic.version = 11 : i64} {
  func.func @decoder_kernel(%arg0: i32, %arg1: memref<8x32xf32, #tpu.memory_space<vmem>>, %arg2: memref<32x128xf32, #tpu.memory_space<vmem>>, %arg3: memref<1x128xf32, #tpu.memory_space<vmem>>, %arg4: memref<128x64xf32, #tpu.memory_space<vmem>>, %arg5: memref<1x64xf32, #tpu.memory_space<vmem>>, %arg6: memref<8x64xf32, #tpu.memory_space<vmem>>) attributes {dimension_semantics = [#tpu.dimension_semantics<parallel>], iteration_bounds = array<i64: 1>, scalar_prefetch = 0 : i64, scratch_operands = 0 : i64, tpu.core_type = #tpu.core_type<tc>, window_params = [{transform_indices = @transform_0, window_bounds = array<i64: 8, 32>}, {pipeline_mode = #tpu.pipeline_mode<synchronous>, transform_indices = @transform_1, window_bounds = array<i64: 32, 128>}, {pipeline_mode = #tpu.pipeline_mode<synchronous>, transform_indices = @transform_2, window_bounds = array<i64: 1, 128>}, {pipeline_mode = #tpu.pipeline_mode<synchronous>, transform_indices = @transform_3, window_bounds = array<i64: 128, 64>}, {pipeline_mode = #tpu.pipeline_mode<synchronous>, transform_indices = @transform_4, window_bounds = array<i64: 1, 64>}, {transform_indices = @transform_5, window_bounds = array<i64: 8, 64>}]} {
    %c0 = arith.constant 0 : index
    %c0_0 = arith.constant 0 : index
    %0 = vector.load %arg1[%c0, %c0_0] : memref<8x32xf32, #tpu.memory_space<vmem>>, vector<8x32xf32>
    %c0_1 = arith.constant 0 : index
    %c0_2 = arith.constant 0 : index
    %1 = vector.load %arg2[%c0_1, %c0_2] : memref<32x128xf32, #tpu.memory_space<vmem>>, vector<32x128xf32>
    %cst = arith.constant dense<0.000000e+00> : vector<8x128xf32>
    %2 = tpu.matmul %0, %1, %cst {dimension_numbers = #tpu.dot_dimension_numbers<[1], [0], [0], [1], [0, 0, 1, 1], [], []>} : vector<8x32xf32>, vector<32x128xf32>, vector<8x128xf32> -> vector<8x128xf32>
    %c0_3 = arith.constant 0 : index
    %c0_4 = arith.constant 0 : index
    %3 = vector.load %arg3[%c0_3, %c0_4] : memref<1x128xf32, #tpu.memory_space<vmem>>, vector<1x128xf32>
    %4 = vector.broadcast %3 : vector<1x128xf32> to vector<8x128xf32>
    %5 = arith.addf %2, %4 : vector<8x128xf32>
    %cst_5 = arith.constant 0.000000e+00 : f32
    %6 = vector.broadcast %cst_5 : f32 to vector<8x128xf32>
    %7 = arith.maximumf %5, %6 : vector<8x128xf32>
    %c0_6 = arith.constant 0 : index
    %c0_7 = arith.constant 0 : index
    %8 = vector.load %arg4[%c0_6, %c0_7] : memref<128x64xf32, #tpu.memory_space<vmem>>, vector<128x64xf32>
    %cst_8 = arith.constant dense<0.000000e+00> : vector<8x64xf32>
    %9 = tpu.matmul %7, %8, %cst_8 {dimension_numbers = #tpu.dot_dimension_numbers<[1], [0], [0], [1], [0, 0, 1, 1], [], []>} : vector<8x128xf32>, vector<128x64xf32>, vector<8x64xf32> -> vector<8x64xf32>
    %c0_9 = arith.constant 0 : index
    %c0_10 = arith.constant 0 : index
    %10 = vector.load %arg5[%c0_9, %c0_10] : memref<1x64xf32, #tpu.memory_space<vmem>>, vector<1x64xf32>
    %11 = vector.broadcast %10 : vector<1x64xf32> to vector<8x64xf32>
    %12 = arith.addf %9, %11 : vector<8x64xf32>
    %c0_11 = arith.constant 0 : index
    %c0_12 = arith.constant 0 : index
    %13 = vector.load %arg6[%c0_11, %c0_12] : memref<8x64xf32, #tpu.memory_space<vmem>>, vector<8x64xf32>
    tpu.vector_store %arg6[%c0_11, %c0_12], %12 {strides = array<i32>} : memref<8x64xf32, #tpu.memory_space<vmem>>, vector<8x64xf32>,
    return
  }
  func.func @transform_0(%arg0: i32) -> (i32, i32) {
    %c0_i32 = arith.constant 0 : i32
    %c0_i32_0 = arith.constant 0 : i32
    return %arg0, %c0_i32 : i32, i32
  }
  func.func @transform_1(%arg0: i32) -> (i32, i32) {
    %c0_i32 = arith.constant 0 : i32
    %c0_i32_0 = arith.constant 0 : i32
    %c0_i32_1 = arith.constant 0 : i32
    return %c0_i32, %c0_i32_0 : i32, i32
  }
  func.func @transform_2(%arg0: i32) -> (i32, i32) {
    %c0_i32 = arith.constant 0 : i32
    %c0_i32_0 = arith.constant 0 : i32
    %c0_i32_1 = arith.constant 0 : i32
    return %c0_i32, %c0_i32_0 : i32, i32
  }
  func.func @transform_3(%arg0: i32) -> (i32, i32) {
    %c0_i32 = arith.constant 0 : i32
    %c0_i32_0 = arith.constant 0 : i32
    %c0_i32_1 = arith.constant 0 : i32
    return %c0_i32, %c0_i32_0 : i32, i32
  }
  func.func @transform_4(%arg0: i32) -> (i32, i32) {
    %c0_i32 = arith.constant 0 : i32
    %c0_i32_0 = arith.constant 0 : i32
    %c0_i32_1 = arith.constant 0 : i32
    return %c0_i32, %c0_i32_0 : i32, i32
  }
  func.func @transform_5(%arg0: i32) -> (i32, i32) {
    %c0_i32 = arith.constant 0 : i32
    %c0_i32_0 = arith.constant 0 : i32
    return %arg0, %c0_i32 : i32, i32
  }
}

</mosaic_0001>

<bundles_post_ra>
// kernel: decoder_forward.1
= control target key start
LH: loop header
LB: loop body
LE: loop exit
PB: predicated region body
PF: predicated region fallthrough
CT: control target
= control target key end

     0   :  { %vm30_vm0 = vcmask 261120   ;;  %s246_s0 = inlined_call_operand.vmem [shape: f32[8,32], index: 0, kind: input, shape index: {}]   ;;  %s247_s1 = inlined_call_operand.vmem [shape: f32[32,128], index: 1, kind: input, shape index: {}]   ;;  %s248_s2 = inlined_call_operand.vmem [shape: f32[1,128], index: 2, kind: input, shape index: {}]   ;;  %s249_s3 = inlined_call_operand.vmem [shape: f32[128,64], index: 3, kind: input, shape index: {}]   ;;  %s250_s4 = inlined_call_operand.vmem [shape: f32[1,64], index: 4, kind: input, shape index: {}]   ;;  %s251_s5 = inlined_call_operand.hbm [shape: f32[8,64], index: 5, kind: output, shape index: {}]  }
   0x1   :  { %v25_v0 = vld [vmem:[%s247_s1 + $0x18] sm:$0xff]  ;;  %v24_v1 = vld [vmem:[%s247_s1 + $0x10] sm:$0xff]  ;;  %v23_v3 = vld [vmem:[%s247_s1 + $0x8] sm:$0xff] }
   0x2   :  { %46 = vmatpush.msra.mxu0 %v25_v0  ;;  %v70_v2 = vld [vmem:[%s249_s3 + $0x78] sm:$0xff]  ;;  %v69_v4 = vld [vmem:[%s249_s3 + $0x70] sm:$0xff]  ;;  %v68_v5 = vld [vmem:[%s249_s3 + $0x68] sm:$0xff] }
   0x3   :  { %75 = vmatpush.msra.mxu1 %v70_v2  ;;  %v22_v6 = vld [vmem:[%s247_s1] sm:$0xff]  ;;  %v66_v9 = vld [vmem:[%s249_s3 + $0x58] sm:$0xff] }
   0x4   :  { %47 = vmatpush.msra.mxu0 %v24_v1  ;;  %v21_v7 = vld [vmem:[%s246_s0] sm:$0xff] }
   0x5   :  { %76 = vmatpush.msra.mxu1 %v69_v4  ;;  %v67_v8 = vld [vmem:[%s249_s3 + $0x60] sm:$0xff] }
   0x6   :  { %48 = vmatpush.msra.mxu0 %v23_v3 }
   0x7   :  { %77 = vmatpush.msra.mxu1 %v68_v5 }
   0x8   :  { %49 = vmatpush.msra.mxu0 %v22_v6 }
   0x9   :  { %10 = vsyncpa [#allocation3], 0  ;;  %113 = vmatmul.msk.f32.vlgmr.msra.gmra.mxu0 %vm30_vm0, %v21_v7  ;;  %78 = vmatpush.msra.mxu1 %v67_v8  ;;  %v65_v10 = vld [vmem:[%s249_s3 + $0x50] sm:$0xff]  ;;  %v64_v11 = vld [vmem:[%s249_s3 + $0x48] sm:$0xff]  ;;  %s143_s12 = smov [#allocation2]   ;;  %s104_s14 = sshll.u32 %s251_s5, 4  ;;  %s105_s14 = int_to_ptr.hbm [resolvable:$true] %s104_s14 }
   0xa   :  { %v63_v12 = vld [vmem:[%s249_s3 + $0x40] sm:$0xff]  ;;  %v62_v13 = vld [vmem:[%s249_s3 + $0x38] sm:$0xff]  ;;  %v61_v14 = vld [vmem:[%s249_s3 + $0x30] sm:$0xff]  ;;  %s102_s1 = sshll.u32 %s143_s12, 4  ;;  %vm95_vm1 = vcmask 523264   ;;  %s103_s1 = int_to_ptr.vmem [resolvable:$true] %s102_s1 }
   0xb   :  { %79 = vmatpush.msra.mxu1 %v66_v9  ;;  %v60_v15 = vld [vmem:[%s249_s3 + $0x28] sm:$0xff]  ;;  %v59_v16 = vld [vmem:[%s249_s3 + $0x20] sm:$0xff]  ;;  %v58_v17 = vld [vmem:[%s249_s3 + $0x18] sm:$0xff] }
   0xc   :  { %v57_v18 = vld [vmem:[%s249_s3 + $0x10] sm:$0xff]  ;;  %v56_v19 = vld [vmem:[%s249_s3 + $0x8] sm:$0xff]  ;;  %v55_v20 = vld [vmem:[%s249_s3] sm:$0xff] }
   0xd   :  { %80 = vmatpush.msra.mxu1 %v65_v10  ;;  %v115_v21 = vld [vmem:[%s248_s2] ss:$0 sm:$0xff] }
   0xe   :  { %v116_v25 = vld [vmem:[%s250_s4] ss:$0 sm:$0xff] }
   0xf   :  { %81 = vmatpush.msra.mxu1 %v64_v11 }
  0x11   :  { %82 = vmatpush.msra.mxu1 %v63_v12 }
  0x13   :  { %83 = vmatpush.msra.mxu1 %v62_v13 }
  0x15   :  { %84 = vmatpush.msra.mxu1 %v61_v14 }
  0x17   :  { %85 = vmatpush.msra.mxu1 %v60_v15 }
  0x19   :  { %86 = vmatpush.msra.mxu1 %v59_v16 }
  0x1b   :  { %87 = vmatpush.msra.mxu1 %v58_v17 }
  0x1d   :  { %88 = vmatpush.msra.mxu1 %v57_v18 }
  0x1f   :  { %89 = vmatpush.msra.mxu1 %v56_v19 }
  0x21   :  { %90 = vmatpush.msra.mxu1 %v55_v20 }
  0x86   :  { %v51_v22 = vpop.f32.mrf.mxu0 }
  0x87   :  { %v52_v23 = vadd.f32 %v115_v21, %v51_v22 }
  0x89   :  { %v54_v24 = vmax.f32 %v52_v23, 0.0 }
  0x8b   :  { %91 = vmatmul.f32.vlgmr.msra.gmra.mxu1 %v54_v24 }
 0x108   :  { %v92_v26 = vpop.f32.mrf.mxu1 }
 0x109   :  { %v93_v27 = vadd.f32 %v116_v25, %v92_v26 }
 0x10b   :  { %96 = vst.msk [vmem:[#allocation2] sm:$0xff] %vm95_vm1, %v93_v27 }
 0x10c   :  { %107 = dma.vmem_to_hbm [thread:$0]  %s103_s1, 128, %s105_s14, [#allocation3]  }
 0x10d   :  { %141 = dma.done.wait [#allocation3], 128  }
 0x10e   :  { %142 = vsyncadd [#allocation3], 4294967168 }
 0x10f   :  { %112 = vsyncpa [#allocation3], 1 }

</bundles_post_ra>
